<compile_context>
chip_gen: v6e
topology: v6e:2x2x1
jax: 0.10.0
libtpu: 0.0.40
codegen_flags: <defaults>
</compile_context>

<pallas_src>
import functools

import jax
import jax.numpy as jnp
import numpy as np
from jax import lax
from jax.experimental import pallas as pl
from jax.experimental.pallas import tpu as pltpu

EPS = 1e-5


def _residual_block_kernel(x_ref, t1_ref, t2_ref, p_ref, g1_ref, b1_ref,
                           g2_ref, b2_ref, out_ref, *, width):
  # x_ref        : (N, H, L)  folded channels-last input, L = W*C (lane axis)
  # t1_ref,t2_ref: (3*L, L)   block-Toeplitz 3x3 conv weights (f32 or bf16)
  # p_ref        : (L, L)     0/1 channel-pooling matrix  tile(eye(C), (W, W))
  # g*, b*       : (1, L)     BN gamma / beta pre-tiled across W (lane-dense)
  # out_ref      : (N, H, L)
  N, H, L = x_ref.shape
  M = N * H
  cnt = float(N * H * width)                 # BN reduction count per channel

  def conv3x3(y_nhl, t_ref):
    """3x3 'SAME' conv as a single (M, 3L) @ (3L, L) MXU matmul."""
    zrow = jnp.zeros((N, 1, L), jnp.float32)
    up = jnp.concatenate([zrow, y_nhl[:, :H - 1, :]], axis=1)     # row h-1
    dn = jnp.concatenate([y_nhl[:, 1:, :], zrow], axis=1)         # row h+1
    patches = jnp.concatenate([up, y_nhl, dn], axis=-1)           # (N, H, 3L)
    patches = patches.reshape(M, 3 * L).astype(t_ref.dtype)
    return jnp.dot(patches, t_ref[...], preferred_element_type=jnp.float32)

  def bn_scale_shift(acc, g_ref, b_ref):
    """Training-mode BN -> lane-tiled (1, L) scale/shift. Two-pass variance."""
    s = jnp.sum(acc, axis=0, keepdims=True)                       # (1, L)
    mean = jnp.dot(s, p_ref[...],
                   preferred_element_type=jnp.float32) / cnt      # per-ch, tiled
    d = acc - mean
    v = jnp.sum(d * d, axis=0, keepdims=True)                     # (1, L)
    var = jnp.dot(v, p_ref[...],
                  preferred_element_type=jnp.float32) / cnt
    scale = g_ref[...] * lax.rsqrt(var + EPS)                     # EUP rsqrt
    shift = b_ref[...] - mean * scale
    return scale, shift

  # ---- conv1 -> BN1 -> ReLU -------------------------------------------------
  acc1 = conv3x3(x_ref[...], t1_ref)                              # (M, L) f32
  sc1, sh1 = bn_scale_shift(acc1, g1_ref, b1_ref)
  y = jnp.maximum(acc1 * sc1 + sh1, 0.0)                          # lane-dense

  # ---- conv2 -> BN2 -> +residual -> ReLU -------------------------------------
  acc2 = conv3x3(y.reshape(N, H, L), t2_ref)
  sc2, sh2 = bn_scale_shift(acc2, g2_ref, b2_ref)
  residual = x_ref[...].reshape(M, L)      # re-read from VMEM; not held live
  z = jnp.maximum(acc2 * sc2 + sh2 + residual, 0.0)
  out_ref[...] = z.reshape(N, H, L)                               # dense store


def _fold_conv3x3_weights(w_hwio, width, dtype):
  """HWIO (3,3,Cin,Cout) -> block-banded Toeplitz (3*W*Cin, W*Cout).

  Row index = ky*(W*Cin) + w_in*Cin + ci, col index = w_out*Cout + co.
  Entry = w[ky, w_in - w_out + 1, ci, co] when |w_in - w_out| <= 1 else 0,
  which bakes both the kx taps and the W-boundary zero padding into the
  weights (the kernel then needs no W padding and no lane shifts).
  """
  ksz, ksz2, cin, cout = w_hwio.shape
  assert ksz == 3 and ksz2 == 3, "residualBlock uses 3x3 convs"
  wi = jnp.arange(width)
  kx = wi[:, None] - wi[None, :] + 1                       # (W_in, W_out)
  valid = ((kx >= 0) & (kx < ksz)).astype(w_hwio.dtype)
  kx = jnp.clip(kx, 0, ksz - 1)
  blocks = w_hwio[:, kx, :, :] * valid[None, :, :, None, None]  # (3,W,W,Ci,Co)
  blocks = jnp.transpose(blocks, (0, 1, 3, 2, 4))          # ky, w_in, ci, w_out, co
  return blocks.reshape(ksz * width * cin, width * cout).astype(dtype)


def residual_block_pallas(x_nchw, w1, g1, b1, w2, g2, b2, *,
                          conv_dtype=jnp.float32):
  """residualBlock forward, stride=1, downsample=None (Cin == Cout).

  x_nchw: (N, C, H, W) f32; w1/w2: (3,3,C,C) HWIO; g*/b*: (C,) BN affine.
  conv_dtype=jnp.bfloat16 runs the MXU operands in bf16 (v6e/v7x); conv
  accumulation and all BN math stay f32.
  """
  N, C, H, W = x_nchw.shape
  L = W * C
  f32 = jnp.float32

  # Glue (outside the kernel): NCHW -> folded channels-last (N, H, W*C).
  x_folded = jnp.transpose(x_nchw, (0, 2, 3, 1)).reshape(N, H, L)

  t1 = _fold_conv3x3_weights(w1, W, conv_dtype)
  t2 = _fold_conv3x3_weights(w2, W, conv_dtype)
  pool = jnp.tile(jnp.eye(C, dtype=f32), (W, W))           # (L, L) channel pool
  g1_l = jnp.tile(g1.astype(f32).reshape(1, C), (1, W))
  b1_l = jnp.tile(b1.astype(f32).reshape(1, C), (1, W))
  g2_l = jnp.tile(g2.astype(f32).reshape(1, C), (1, W))
  b2_l = jnp.tile(b2.astype(f32).reshape(1, C), (1, W))

  vmem = pl.BlockSpec(memory_space=pltpu.MemorySpace.VMEM)
  out_folded = pl.pallas_call(
      functools.partial(_residual_block_kernel, width=W),
      out_shape=jax.ShapeDtypeStruct((N, H, L), f32),
      in_specs=[vmem] * 8,
      out_specs=vmem,
  )(x_folded, t1, t2, pool, g1_l, b1_l, g2_l, b2_l)

  # Folded (N, H, W*C) -> NCHW.
  return jnp.transpose(out_folded.reshape(N, H, W, C), (0, 3, 1, 2))


# ---------------- pure-JAX reference (for correctness check) ----------------
def _bn_train(x_nhwc, gamma, beta):
  mean = jnp.mean(x_nhwc, axis=(0, 1, 2))
  var = jnp.var(x_nhwc, axis=(0, 1, 2))            # biased, like torch BN
  return (x_nhwc - mean) * lax.rsqrt(var + EPS) * gamma + beta


def _conv3x3_ref(x_nhwc, w_hwio):
  return lax.conv_general_dilated(
      x_nhwc, w_hwio, window_strides=(1, 1), padding="SAME",
      dimension_numbers=("NHWC", "HWIO", "NHWC"))


def residual_block_ref(x_nchw, w1, g1, b1, w2, g2, b2):
  x = jnp.transpose(x_nchw, (0, 2, 3, 1))
  out = jnp.maximum(_bn_train(_conv3x3_ref(x, w1), g1, b1), 0.0)
  out = _bn_train(_conv3x3_ref(out, w2), g2, b2)
  out = jnp.maximum(out + x, 0.0)
  return jnp.transpose(out, (0, 3, 1, 2))


if __name__ == "__main__":
  # residualBlock(in_channels=8, n_filters=8, stride=1, downsample=None)
  # W*C = 128 -> fully lane-dense folded layout.
  N, C, H, W = 2, 8, 16, 16
  key = jax.random.PRNGKey(0)
  kx, k1, k2, kg1, kb1, kg2, kb2 = jax.random.split(key, 7)

  x = jax.random.normal(kx, (N, C, H, W), jnp.float32)
  w1 = jax.random.normal(k1, (3, 3, C, C), jnp.float32) * 0.1   # HWIO
  w2 = jax.random.normal(k2, (3, 3, C, C), jnp.float32) * 0.1   # HWIO
  g1 = 1.0 + 0.1 * jax.random.normal(kg1, (C,), jnp.float32)
  b1 = 0.1 * jax.random.normal(kb1, (C,), jnp.float32)
  g2 = 1.0 + 0.1 * jax.random.normal(kg2, (C,), jnp.float32)
  b2 = 0.1 * jax.random.normal(kb2, (C,), jnp.float32)

  ref = jax.block_until_ready(
      residual_block_ref(x, w1, g1, b1, w2, g2, b2))

  # f32 MXU-operand path: tight check against the reference.
  out = jax.block_until_ready(
      residual_block_pallas(x, w1, g1, b1, w2, g2, b2))
  np.testing.assert_allclose(np.asarray(out), np.asarray(ref),
                             rtol=1e-4, atol=1e-4)

  # bf16 MXU-operand path (recommended on v6e/v7x); f32 accumulation / BN.
  out_bf16 = jax.block_until_ready(
      residual_block_pallas(x, w1, g1, b1, w2, g2, b2,
                            conv_dtype=jnp.bfloat16))
  np.testing.assert_allclose(np.asarray(out_bf16), np.asarray(ref),
                             rtol=1e-1, atol=1e-1)

  print("KERNEL_OK")
</pallas_src>

<mosaic_0001>
module attributes {stable_mosaic.version = 11 : i64} {
  func.func @_residual_block_kernel(%arg0: memref<2x16x128xf32, #tpu.memory_space<vmem>>, %arg1: memref<384x128xf32, #tpu.memory_space<vmem>>, %arg2: memref<384x128xf32, #tpu.memory_space<vmem>>, %arg3: memref<128x128xf32, #tpu.memory_space<vmem>>, %arg4: memref<1x128xf32, #tpu.memory_space<vmem>>, %arg5: memref<1x128xf32, #tpu.memory_space<vmem>>, %arg6: memref<1x128xf32, #tpu.memory_space<vmem>>, %arg7: memref<1x128xf32, #tpu.memory_space<vmem>>, %arg8: memref<2x16x128xf32, #tpu.memory_space<vmem>>) attributes {dimension_semantics = [], scalar_prefetch = 0 : i64, scratch_operands = 0 : i64, tpu.core_type = #tpu.core_type<tc>} {
    %c0 = arith.constant 0 : index
    %c0_0 = arith.constant 0 : index
    %c0_1 = arith.constant 0 : index
    %0 = vector.load %arg0[%c0, %c0_0, %c0_1] : memref<2x16x128xf32, #tpu.memory_space<vmem>>, vector<2x16x128xf32>
    %cst = arith.constant 0.000000e+00 : f32
    %1 = vector.broadcast %cst : f32 to vector<2x1x128xf32>
    %2 = vector.extract_strided_slice %0 {offsets = [0, 0, 0], sizes = [2, 15, 128], strides = [1, 1, 1]} : vector<2x16x128xf32> to vector<2x15x128xf32>
    %3 = tpu.concatenate %1, %2 in 1 : vector<2x1x128xf32>, vector<2x15x128xf32> -> vector<2x16x128xf32>
    %4 = vector.extract_strided_slice %0 {offsets = [0, 1, 0], sizes = [2, 15, 128], strides = [1, 1, 1]} : vector<2x16x128xf32> to vector<2x15x128xf32>
    %5 = tpu.concatenate %4, %1 in 1 : vector<2x15x128xf32>, vector<2x1x128xf32> -> vector<2x16x128xf32>
    %6 = tpu.concatenate %3, %0, %5 in 2 : vector<2x16x128xf32>, vector<2x16x128xf32>, vector<2x16x128xf32> -> vector<2x16x384xf32>
    %7 = vector.shape_cast %6 : vector<2x16x384xf32> to vector<32x384xf32>
    %c0_2 = arith.constant 0 : index
    %c0_3 = arith.constant 0 : index
    %8 = vector.load %arg1[%c0_2, %c0_3] : memref<384x128xf32, #tpu.memory_space<vmem>>, vector<384x128xf32>
    %cst_4 = arith.constant dense<0.000000e+00> : vector<32x128xf32>
    %9 = tpu.matmul %7, %8, %cst_4 {dimension_numbers = #tpu.dot_dimension_numbers<[1], [0], [0], [1], [0, 0, 1, 1], [], []>} : vector<32x384xf32>, vector<384x128xf32>, vector<32x128xf32> -> vector<32x128xf32>
    %cst_5 = arith.constant dense<0.000000e+00> : vector<128xf32>
    %10 = vector.multi_reduction <add>, %9, %cst_5 [0] : vector<32x128xf32> to vector<128xf32>
    %11 = vector.shape_cast %10 : vector<128xf32> to vector<1x128xf32>
    %c0_6 = arith.constant 0 : index
    %c0_7 = arith.constant 0 : index
    %12 = vector.load %arg3[%c0_6, %c0_7] : memref<128x128xf32, #tpu.memory_space<vmem>>, vector<128x128xf32>
    %cst_8 = arith.constant dense<0.000000e+00> : vector<1x128xf32>
    %13 = tpu.matmul %11, %12, %cst_8 {dimension_numbers = #tpu.dot_dimension_numbers<[1], [0], [0], [1], [0, 0, 1, 1], [], []>} : vector<1x128xf32>, vector<128x128xf32>, vector<1x128xf32> -> vector<1x128xf32>
    %cst_9 = arith.constant 5.120000e+02 : f32
    %14 = vector.broadcast %cst_9 : f32 to vector<1x128xf32>
    %15 = arith.divf %13, %14 : vector<1x128xf32>
    %16 = vector.broadcast %15 : vector<1x128xf32> to vector<32x128xf32>
    %17 = arith.subf %9, %16 : vector<32x128xf32>
    %18 = arith.mulf %17, %17 : vector<32x128xf32>
    %cst_10 = arith.constant dense<0.000000e+00> : vector<128xf32>
    %19 = vector.multi_reduction <add>, %18, %cst_10 [0] : vector<32x128xf32> to vector<128xf32>
    %20 = vector.shape_cast %19 : vector<128xf32> to vector<1x128xf32>
    %c0_11 = arith.constant 0 : index
    %c0_12 = arith.constant 0 : index
    %21 = vector.load %arg3[%c0_11, %c0_12] : memref<128x128xf32, #tpu.memory_space<vmem>>, vector<128x128xf32>
    %cst_13 = arith.constant dense<0.000000e+00> : vector<1x128xf32>
    %22 = tpu.matmul %20, %21, %cst_13 {dimension_numbers = #tpu.dot_dimension_numbers<[1], [0], [0], [1], [0, 0, 1, 1], [], []>} : vector<1x128xf32>, vector<128x128xf32>, vector<1x128xf32> -> vector<1x128xf32>
    %cst_14 = arith.constant 5.120000e+02 : f32
    %23 = vector.broadcast %cst_14 : f32 to vector<1x128xf32>
    %24 = arith.divf %22, %23 : vector<1x128xf32>
    %c0_15 = arith.constant 0 : index
    %c0_16 = arith.constant 0 : index
    %25 = vector.load %arg4[%c0_15, %c0_16] : memref<1x128xf32, #tpu.memory_space<vmem>>, vector<1x128xf32>
    %cst_17 = arith.constant 9.99999974E-6 : f32
    %26 = vector.broadcast %cst_17 : f32 to vector<1x128xf32>
    %27 = arith.addf %24, %26 : vector<1x128xf32>
    %28 = math.rsqrt %27 : vector<1x128xf32>
    %29 = arith.mulf %25, %28 : vector<1x128xf32>
    %c0_18 = arith.constant 0 : index
    %c0_19 = arith.constant 0 : index
    %30 = vector.load %arg5[%c0_18, %c0_19] : memref<1x128xf32, #tpu.memory_space<vmem>>, vector<1x128xf32>
    %31 = arith.mulf %15, %29 : vector<1x128xf32>
    %32 = arith.subf %30, %31 : vector<1x128xf32>
    %33 = vector.broadcast %29 : vector<1x128xf32> to vector<32x128xf32>
    %34 = arith.mulf %9, %33 : vector<32x128xf32>
    %35 = vector.broadcast %32 : vector<1x128xf32> to vector<32x128xf32>
    %36 = arith.addf %34, %35 : vector<32x128xf32>
    %cst_20 = arith.constant 0.000000e+00 : f32
    %37 = vector.broadcast %cst_20 : f32 to vector<32x128xf32>
    %38 = arith.maximumf %36, %37 : vector<32x128xf32>
    %39 = vector.shape_cast %38 : vector<32x128xf32> to vector<2x16x128xf32>
    %cst_21 = arith.constant 0.000000e+00 : f32
    %40 = vector.broadcast %cst_21 : f32 to vector<2x1x128xf32>
    %41 = vector.extract_strided_slice %39 {offsets = [0, 0, 0], sizes = [2, 15, 128], strides = [1, 1, 1]} : vector<2x16x128xf32> to vector<2x15x128xf32>
    %42 = tpu.concatenate %40, %41 in 1 : vector<2x1x128xf32>, vector<2x15x128xf32> -> vector<2x16x128xf32>
    %43 = vector.extract_strided_slice %39 {offsets = [0, 1, 0], sizes = [2, 15, 128], strides = [1, 1, 1]} : vector<2x16x128xf32> to vector<2x15x128xf32>
    %44 = tpu.concatenate %43, %40 in 1 : vector<2x15x128xf32>, vector<2x1x128xf32> -> vector<2x16x128xf32>
    %45 = tpu.concatenate %42, %39, %44 in 2 : vector<2x16x128xf32>, vector<2x16x128xf32>, vector<2x16x128xf32> -> vector<2x16x384xf32>
    %46 = vector.shape_cast %45 : vector<2x16x384xf32> to vector<32x384xf32>
    %c0_22 = arith.constant 0 : index
    %c0_23 = arith.constant 0 : index
    %47 = vector.load %arg2[%c0_22, %c0_23] : memref<384x128xf32, #tpu.memory_space<vmem>>, vector<384x128xf32>
    %cst_24 = arith.constant dense<0.000000e+00> : vector<32x128xf32>
    %48 = tpu.matmul %46, %47, %cst_24 {dimension_numbers = #tpu.dot_dimension_numbers<[1], [0], [0], [1], [0, 0, 1, 1], [], []>} : vector<32x384xf32>, vector<384x128xf32>, vector<32x128xf32> -> vector<32x128xf32>
    %cst_25 = arith.constant dense<0.000000e+00> : vector<128xf32>
    %49 = vector.multi_reduction <add>, %48, %cst_25 [0] : vector<32x128xf32> to vector<128xf32>
    %50 = vector.shape_cast %49 : vector<128xf32> to vector<1x128xf32>
    %c0_26 = arith.constant 0 : index
    %c0_27 = arith.constant 0 : index
    %51 = vector.load %arg3[%c0_26, %c0_27] : memref<128x128xf32, #tpu.memory_space<vmem>>, vector<128x128xf32>
    %cst_28 = arith.constant dense<0.000000e+00> : vector<1x128xf32>
    %52 = tpu.matmul %50, %51, %cst_28 {dimension_numbers = #tpu.dot_dimension_numbers<[1], [0], [0], [1], [0, 0, 1, 1], [], []>} : vector<1x128xf32>, vector<128x128xf32>, vector<1x128xf32> -> vector<1x128xf32>
    %cst_29 = arith.constant 5.120000e+02 : f32
    %53 = vector.broadcast %cst_29 : f32 to vector<1x128xf32>
    %54 = arith.divf %52, %53 : vector<1x128xf32>
    %55 = vector.broadcast %54 : vector<1x128xf32> to vector<32x128xf32>
    %56 = arith.subf %48, %55 : vector<32x128xf32>
    %57 = arith.mulf %56, %56 : vector<32x128xf32>
    %cst_30 = arith.constant dense<0.000000e+00> : vector<128xf32>
    %58 = vector.multi_reduction <add>, %57, %cst_30 [0] : vector<32x128xf32> to vector<128xf32>
    %59 = vector.shape_cast %58 : vector<128xf32> to vector<1x128xf32>
    %c0_31 = arith.constant 0 : index
    %c0_32 = arith.constant 0 : index
    %60 = vector.load %arg3[%c0_31, %c0_32] : memref<128x128xf32, #tpu.memory_space<vmem>>, vector<128x128xf32>
    %cst_33 = arith.constant dense<0.000000e+00> : vector<1x128xf32>
    %61 = tpu.matmul %59, %60, %cst_33 {dimension_numbers = #tpu.dot_dimension_numbers<[1], [0], [0], [1], [0, 0, 1, 1], [], []>} : vector<1x128xf32>, vector<128x128xf32>, vector<1x128xf32> -> vector<1x128xf32>
    %cst_34 = arith.constant 5.120000e+02 : f32
    %62 = vector.broadcast %cst_34 : f32 to vector<1x128xf32>
    %63 = arith.divf %61, %62 : vector<1x128xf32>
    %c0_35 = arith.constant 0 : index
    %c0_36 = arith.constant 0 : index
    %64 = vector.load %arg6[%c0_35, %c0_36] : memref<1x128xf32, #tpu.memory_space<vmem>>, vector<1x128xf32>
    %cst_37 = arith.constant 9.99999974E-6 : f32
    %65 = vector.broadcast %cst_37 : f32 to vector<1x128xf32>
    %66 = arith.addf %63, %65 : vector<1x128xf32>
    %67 = math.rsqrt %66 : vector<1x128xf32>
    %68 = arith.mulf %64, %67 : vector<1x128xf32>
    %c0_38 = arith.constant 0 : index
    %c0_39 = arith.constant 0 : index
    %69 = vector.load %arg7[%c0_38, %c0_39] : memref<1x128xf32, #tpu.memory_space<vmem>>, vector<1x128xf32>
    %70 = arith.mulf %54, %68 : vector<1x128xf32>
    %71 = arith.subf %69, %70 : vector<1x128xf32>
    %c0_40 = arith.constant 0 : index
    %c0_41 = arith.constant 0 : index
    %c0_42 = arith.constant 0 : index
    %72 = vector.load %arg0[%c0_40, %c0_41, %c0_42] : memref<2x16x128xf32, #tpu.memory_space<vmem>>, vector<2x16x128xf32>
    %73 = vector.shape_cast %72 : vector<2x16x128xf32> to vector<32x128xf32>
    %74 = vector.broadcast %68 : vector<1x128xf32> to vector<32x128xf32>
    %75 = arith.mulf %48, %74 : vector<32x128xf32>
    %76 = vector.broadcast %71 : vector<1x128xf32> to vector<32x128xf32>
    %77 = arith.addf %75, %76 : vector<32x128xf32>
    %78 = arith.addf %77, %73 : vector<32x128xf32>
    %cst_43 = arith.constant 0.000000e+00 : f32
    %79 = vector.broadcast %cst_43 : f32 to vector<32x128xf32>
    %80 = arith.maximumf %78, %79 : vector<32x128xf32>
    %81 = vector.shape_cast %80 : vector<32x128xf32> to vector<2x16x128xf32>
    %c0_44 = arith.constant 0 : index
    %c0_45 = arith.constant 0 : index
    %c0_46 = arith.constant 0 : index
    %82 = vector.load %arg8[%c0_44, %c0_45, %c0_46] : memref<2x16x128xf32, #tpu.memory_space<vmem>>, vector<2x16x128xf32>
    tpu.vector_store %arg8[%c0_44, %c0_45, %c0_46], %81 {strides = array<i32>} : memref<2x16x128xf32, #tpu.memory_space<vmem>>, vector<2x16x128xf32>,
    return
  }
}

</mosaic_0001>

<bundles_post_ra>
// kernel: tpu_custom_call.1
= control target key start
LH: loop header
LB: loop body
LE: loop exit
PB: predicated region body
PF: predicated region fallthrough
CT: control target
= control target key end

     0   :  { %13 = vsyncpa [#allocation3], 0  ;;  %s1923_s0 = inlined_call_operand.hbm [shape: f32[2,16,128], index: 0, kind: input, shape index: {}]   ;;  %s1924_s1 = inlined_call_operand.hbm [shape: f32[384,128], index: 1, kind: input, shape index: {}]   ;;  %s1925_s2 = inlined_call_operand.hbm [shape: f32[384,128], index: 2, kind: input, shape index: {}]   ;;  %s1926_s3 = inlined_call_operand.hbm [shape: f32[128,128], index: 3, kind: input, shape index: {}]   ;;  %s1927_s4 = inlined_call_operand.vmem [shape: f32[1,128], index: 4, kind: input, shape index: {}]   ;;  %s1928_s5 = inlined_call_operand.vmem [shape: f32[1,128], index: 5, kind: input, shape index: {}]   ;;  %s1929_s6 = inlined_call_operand.vmem [shape: f32[1,128], index: 6, kind: input, shape index: {}]   ;;  %s1930_s7 = inlined_call_operand.vmem [shape: f32[1,128], index: 7, kind: input, shape index: {}]   ;;  %s1931_s8 = inlined_call_operand.hbm [shape: f32[2,16,128], index: 8, kind: output, shape index: {}]  }
   0x1   :  { %14 = vsyncpa [#allocation6], 0 }
   0x2   :  { %15 = vsyncpa [#allocation9], 0 }
   0x3   :  { %16 = vsyncpa [#allocation4], 0  ;;  %s1578_s27 = smov [#allocation5]   ;;  %s1579_s29 = smov [#allocation2]  }
   0x4   :  { %s34_s28 = sshll.u32 %s1578_s27, 4  ;;  %s22_s30 = sshll.u32 %s1579_s29, 4  ;;  %s35_s28 = int_to_ptr.vmem [resolvable:$true] %s34_s28  ;;  %s23_s30 = int_to_ptr.vmem [resolvable:$true] %s22_s30 }
   0x5   :  { %s1478_s9 = scalar_lea.vmem %s35_s28, 6144  ;;  %p1483_p1 = scmp.lt.s32.totalorder %s35_s28, %s35_s28 }
   0x6   :  { %p1479_p0 = scmp.ne.s32.totalorder %s35_s28, %s1478_s9  ;;  %p1484_p2 = scmp.lt.s32.totalorder %s1478_s9, %s1478_s9 }
   0x8   :  { %p1485_p3 = por %p1484_p2, %p1483_p1 }
   0xa   :  { %p1486_p4 = pnand %p1485_p3, %p1479_p0 }
   0xc   :  { %1489 = shalt.err (!%p1486_p4)
}
   0xd   :  { %s1580_s10 = smov 128   ;;  %s1581_s11 = smov 8  }
   0xe   :  { %40 = dma.hbm_to_vmem [thread:$0]  %s1924_s1, 6144, %s35_s28, [#allocation6], %s1580_s10, %s1580_s10, %s1581_s11  }
   0xf   :  { %s1498_s14 = scalar_lea.vmem %s23_s30, 512  ;;  %p1503_p6 = scmp.lt.s32.totalorder %s23_s30, %s23_s30 }
  0x10   :  { %p1499_p5 = scmp.ne.s32.totalorder %s23_s30, %s1498_s14  ;;  %p1504_p7 = scmp.lt.s32.totalorder %s1498_s14, %s1498_s14 }
  0x12   :  { %p1505_p8 = por %p1504_p7, %p1503_p6 }
  0x14   :  { %p1506_p9 = pnand %p1505_p8, %p1499_p5 }
  0x16   :  { %1509 = shalt.err (!%p1506_p9)
}
  0x17   :  { %28 = dma.hbm_to_vmem [thread:$0]  %s1923_s0, 512, %s23_s30, [#allocation3], %s1580_s10, %s1580_s10, %s1581_s11  }
  0x18   :  { %s1582_s17 = smov [#allocation7]   ;;  %s1583_s19 = smov [#allocation8]  }
  0x19   :  { %s46_s18 = sshll.u32 %s1582_s17, 4  ;;  %s58_s20 = sshll.u32 %s1583_s19, 4  ;;  %s47_s18 = int_to_ptr.vmem [resolvable:$true] %s46_s18  ;;  %s59_s20 = int_to_ptr.vmem [resolvable:$true] %s58_s20 }
  0x1a   :  { %s1518_s1 = scalar_lea.vmem %s47_s18, 6144  ;;  %p1523_p11 = scmp.lt.s32.totalorder %s47_s18, %s47_s18 }
  0x1b   :  { %p1519_p10 = scmp.ne.s32.totalorder %s47_s18, %s1518_s1  ;;  %p1524_p12 = scmp.lt.s32.totalorder %s1518_s1, %s1518_s1 }
  0x1d   :  { %p1525_p13 = por %p1524_p12, %p1523_p11 }
  0x1f   :  { %p1526_p0 = pnand %p1525_p13, %p1519_p10 }
  0x21   :  { %1529 = shalt.err (!%p1526_p0)
}
  0x22   :  { %52 = dma.hbm_to_vmem [thread:$0]  %s1925_s2, 6144, %s47_s18, [#allocation6], %s1580_s10, %s1580_s10, %s1581_s11  }
  0x23   :  { %s1538_s0 = scalar_lea.vmem %s59_s20, 2048  ;;  %p1543_p2 = scmp.lt.s32.totalorder %s59_s20, %s59_s20 }
  0x24   :  { %p1539_p1 = scmp.ne.s32.totalorder %s59_s20, %s1538_s0  ;;  %p1544_p3 = scmp.lt.s32.totalorder %s1538_s0, %s1538_s0 }
  0x26   :  { %p1545_p4 = por %p1544_p3, %p1543_p2 }
  0x28   :  { %p1546_p5 = pnand %p1545_p4, %p1539_p1 }
  0x2a   :  { %1549 = shalt.err (!%p1546_p5)
}
  0x2b   :  { %64 = dma.hbm_to_vmem [thread:$0]  %s1926_s3, 2048, %s59_s20, [#allocation9], %s1580_s10, %s1580_s10, %s1581_s11  }
  0x2c   :  { %1570 = dma.done.wait [#allocation3], 512  }
  0x2d   :  { %1571 = vsyncadd [#allocation3], 4294966784 }
  0x2e   :  { %1572 = dma.done.wait [#allocation6], 12288  }
  0x2f   :  { %1573 = vsyncadd [#allocation6], 4294955008 }
  0x30   :  { %1574 = dma.done.wait [#allocation9], 2048  }
  0x31   :  { %1575 = vsyncadd [#allocation9], 4294965248  ;;  %v150_v0 = vld [vmem:[#allocation5 + $0xf8] sm:$0xff]  ;;  %v149_v2 = vld [vmem:[#allocation5 + $0xf0] sm:$0xff]  ;;  %vm93_vm0 = vcmask 1040384   ;;  %vm106_vm1 = vcmask 1046528  }
  0x32   :  { %v134_v1 = vld [vmem:[#allocation5 + $0x78] sm:$0xff]  ;;  %1045 = vmatprep.subr.mxu0 %v150_v0  ;;  %v133_v4 = vld [vmem:[#allocation5 + $0x70] sm:$0xff]  ;;  %v148_v5 = vld [vmem:[#allocation5 + $0xe8] sm:$0xff]  ;;  %vm1585_vm3 = vmmov 0  }
  0x33   :  { %v166_v3 = vld [vmem:[#allocation5 + $0x178] sm:$0xff]  ;;  %1046 = vmatpush3.msra.mxu0 %v134_v1  ;;  %v165_v6 = vld [vmem:[#allocation5 + $0x170] sm:$0xff]  ;;  %v132_v7 = vld [vmem:[#allocation5 + $0x68] sm:$0xff]  ;;  %v1584_v1 = vmov 0.0  }
  0x34   :  { %1241 = vmatprep.subr.mxu1 %v166_v3  ;;  %1047 = vmatprep.subr.mxu0 %v149_v2  ;;  %v164_v8 = vld [vmem:[#allocation5 + $0x168] sm:$0xff]  ;;  %v147_v9 = vld [vmem:[#allocation5 + $0xe0] sm:$0xff]  ;;  %v146_v12 = vld [vmem:[#allocation5 + $0xd8] sm:$0xff] }
  0x35   :  { %1242 = vmatpush3.msra.mxu1 %v166_v3  ;;  %1048 = vmatpush3.msra.mxu0 %v133_v4  ;;  %v131_v10 = vld [vmem:[#allocation5 + $0x60] sm:$0xff]  ;;  %v130_v13 = vld [vmem:[#allocation5 + $0x58] sm:$0xff]  ;;  %v145_v15 = vld [vmem:[#allocation5 + $0xd0] sm:$0xff] }
  0x36   :  { %1243 = vmatprep.subr.mxu1 %v165_v6  ;;  %1049 = vmatprep.subr.mxu0 %v148_v5  ;;  %v163_v11 = vld [vmem:[#allocation5 + $0x160] sm:$0xff]  ;;  %v162_v14 = vld [vmem:[#allocation5 + $0x158] sm:$0xff]  ;;  %v129_v16 = vld [vmem:[#allocation5 + $0x50] sm:$0xff] }
  0x37   :  { %1244 = vmatpush3.msra.mxu1 %v165_v6  ;;  %1050 = vmatpush3.msra.mxu0 %v132_v7  ;;  %v161_v17 = vld [vmem:[#allocation5 + $0x150] sm:$0xff]  ;;  %v144_v18 = vld [vmem:[#allocation5 + $0xc8] sm:$0xff]  ;;  %v143_v21 = vld [vmem:[#allocation5 + $0xc0] sm:$0xff] }
  0x38   :  { %1245 = vmatprep.subr.mxu1 %v164_v8  ;;  %1051 = vmatprep.subr.mxu0 %v147_v9  ;;  %v128_v19 = vld [vmem:[#allocation5 + $0x48] sm:$0xff]  ;;  %v127_v22 = vld [vmem:[#allocation5 + $0x40] sm:$0xff]  ;;  %v142_v24 = vld [vmem:[#allocation5 + $0xb8] sm:$0xff] }
  0x39   :  { %1246 = vmatpush3.msra.mxu1 %v164_v8  ;;  %1052 = vmatpush3.msra.mxu0 %v131_v10  ;;  %v160_v20 = vld [vmem:[#allocation5 + $0x148] sm:$0xff]  ;;  %v159_v23 = vld [vmem:[#allocation5 + $0x140] sm:$0xff]  ;;  %v126_v25 = vld [vmem:[#allocation5 + $0x38] sm:$0xff] }
  0x3a   :  { %1247 = vmatprep.subr.mxu1 %v163_v11  ;;  %1053 = vmatprep.subr.mxu0 %v146_v12  ;;  %v158_v26 = vld [vmem:[#allocation5 + $0x138] sm:$0xff]  ;;  %v141_v27 = vld [vmem:[#allocation5 + $0xb0] sm:$0xff]  ;;  %v140_v30 = vld [vmem:[#allocation5 + $0xa8] sm:$0xff] }
  0x3b   :  { %1248 = vmatpush3.msra.mxu1 %v163_v11  ;;  %1054 = vmatpush3.msra.mxu0 %v130_v13  ;;  %v125_v28 = vld [vmem:[#allocation5 + $0x30] sm:$0xff]  ;;  %v124_v31 = vld [vmem:[#allocation5 + $0x28] sm:$0xff]  ;;  %v139_v33 = vld [vmem:[#allocation5 + $0xa0] sm:$0xff] }
  0x3c   :  { %1249 = vmatprep.subr.mxu1 %v162_v14  ;;  %1055 = vmatprep.subr.mxu0 %v145_v15  ;;  %v157_v29 = vld [vmem:[#allocation5 + $0x130] sm:$0xff]  ;;  %v156_v32 = vld [vmem:[#allocation5 + $0x128] sm:$0xff]  ;;  %v123_v34 = vld [vmem:[#allocation5 + $0x20] sm:$0xff] }
  0x3d   :  { %1250 = vmatpush3.msra.mxu1 %v162_v14  ;;  %1056 = vmatpush3.msra.mxu0 %v129_v16  ;;  %v155_v35 = vld [vmem:[#allocation5 + $0x120] sm:$0xff]  ;;  %v138_v36 = vld [vmem:[#allocation5 + $0x98] sm:$0xff]  ;;  %v137_v39 = vld [vmem:[#allocation5 + $0x90] sm:$0xff] }
  0x3e   :  { %1251 = vmatprep.subr.mxu1 %v161_v17  ;;  %1057 = vmatprep.subr.mxu0 %v144_v18  ;;  %v122_v37 = vld [vmem:[#allocation5 + $0x18] sm:$0xff]  ;;  %v1656_v40 = vld [vmem:[#allocation2] sm:$0xff]  ;;  %v1658_v41 = vld [vmem:[#allocation2 + $0x8] sm:$0xff] }
  0x3f   :  { %1252 = vmatpush3.msra.mxu1 %v161_v17  ;;  %1058 = vmatpush3.msra.mxu0 %v128_v19  ;;  %v154_v38 = vld [vmem:[#allocation5 + $0x118] sm:$0xff]  ;;  %v121_v42 = vld [vmem:[#allocation5 + $0x10] sm:$0xff]  ;;  %v136_v44 = vld [vmem:[#allocation5 + $0x88] sm:$0xff]  ;;  %v107_v49 = vrot.slane %v1656_v40, 1  ;;  %v108_v50 = vrot.slane %v1658_v41, 1  ;;  %v94_v53 = vrot.slane %v1656_v40, 7 }
  0x40   :  { %1253 = vmatprep.subr.mxu1 %v160_v20  ;;  %1059 = vmatprep.subr.mxu0 %v143_v21  ;;  %v153_v43 = vld [vmem:[#allocation5 + $0x110] sm:$0xff]  ;;  %v1662_v46 = vld [vmem:[#allocation2 + $0x18] sm:$0xff]  ;;  %v120_v47 = vld [vmem:[#allocation5 + $0x8] sm:$0xff]  ;;  %v95_v58 = vrot.slane %v1658_v41, 7 }
  0x41   :  { %1254 = vmatpush3.msra.mxu1 %v160_v20  ;;  %1060 = vmatpush3.msra.mxu0 %v127_v22  ;;  %v1660_v45 = vld [vmem:[#allocation2 + $0x10] sm:$0xff]  ;;  %v152_v48 = vld [vmem:[#allocation5 + $0x108] sm:$0xff]  ;;  %v135_v51 = vld [vmem:[#allocation5 + $0x80] sm:$0xff]  ;;  %v111_v55 = vrot.slane %v1662_v46, 1  ;;  %v109_v59 = vsel %vm106_vm1, %v107_v49, %v108_v50  ;;  %v98_v63 = vrot.slane %v1662_v46, 7 }
  0x42   :  { %1255 = vmatprep.subr.mxu1 %v159_v23  ;;  %1061 = vmatprep.subr.mxu0 %v142_v24  ;;  %v119_v52 = vld [vmem:[#allocation5] sm:$0xff]  ;;  %v110_v54 = vrot.slane %v1660_v45, 1  ;;  %vm1670_vm2 = vmneg %vm93_vm0  ;;  %v96_v61 = vsel %vm93_vm0, %v94_v53, %v95_v58  ;;  %v97_v62 = vrot.slane %v1660_v45, 7  ;;  %v1692_v2 = vld [vmem:[#allocation8 + $0x78] sm:$0xff] }
  0x43   :  { %1256 = vmatpush3.msra.mxu1 %v159_v23  ;;  %1062 = vmatpush3.msra.mxu0 %v126_v25  ;;  %v151_v57 = vld [vmem:[#allocation5 + $0x100] sm:$0xff]  ;;  %v1698_v3 = vld [vmem:[#allocation8 + $0x70] sm:$0xff]  ;;  %v1704_v4 = vld [vmem:[#allocation8 + $0x68] sm:$0xff] }
  0x44   :  { %1257 = vmatprep.subr.mxu1 %v158_v26  ;;  %1063 = vmatprep.subr.mxu0 %v141_v27  ;;  %v112_v60 = vsel %vm106_vm1, %v110_v54, %v111_v55  ;;  %v99_v0 = vsel %vm93_vm0, %v97_v62, %v98_v63  ;;  %v1710_v5 = vld [vmem:[#allocation8 + $0x60] sm:$0xff]  ;;  %v1716_v6 = vld [vmem:[#allocation8 + $0x58] sm:$0xff]  ;;  %v1722_v7 = vld [vmem:[#allocation8 + $0x50] sm:$0xff] }
  0x45   :  { %1258 = vmatpush3.msra.mxu1 %v158_v26  ;;  %1064 = vmatpush3.msra.mxu0 %v125_v28  ;;  %v1728_v8 = vld [vmem:[#allocation8 + $0x48] sm:$0xff]  ;;  %v1734_v9 = vld [vmem:[#allocation8 + $0x40] sm:$0xff]  ;;  %v1740_v10 = vld [vmem:[#allocation8 + $0x38] sm:$0xff] }
  0x46   :  { %1259 = vmatprep.subr.mxu1 %v157_v29  ;;  %1065 = vmatprep.subr.mxu0 %v140_v30  ;;  %v1746_v11 = vld [vmem:[#allocation8 + $0x30] sm:$0xff]  ;;  %v1752_v12 = vld [vmem:[#allocation8 + $0x28] sm:$0xff]  ;;  %v1758_v13 = vld [vmem:[#allocation8 + $0x20] sm:$0xff] }
  0x47   :  { %1260 = vmatpush3.msra.mxu1 %v157_v29  ;;  %1066 = vmatpush3.msra.mxu0 %v124_v31  ;;  %v1764_v14 = vld [vmem:[#allocation8 + $0x18] sm:$0xff]  ;;  %v1770_v15 = vld [vmem:[#allocation8 + $0x10] sm:$0xff]  ;;  %v1776_v16 = vld [vmem:[#allocation8 + $0x8] sm:$0xff] }
  0x48   :  { %1261 = vmatprep.subr.mxu1 %v156_v32  ;;  %1067 = vmatprep.subr.mxu0 %v139_v33  ;;  %v1778_v17 = vld [vmem:[#allocation8] sm:$0xff] }
  0x49   :  { %1262 = vmatpush3.msra.mxu1 %v156_v32  ;;  %1068 = vmatpush3.msra.mxu0 %v123_v34 }
  0x4a   :  { %1263 = vmatprep.subr.mxu1 %v155_v35  ;;  %1069 = vmatprep.subr.mxu0 %v138_v36 }
  0x4b   :  { %1264 = vmatpush3.msra.mxu1 %v155_v35  ;;  %1070 = vmatpush3.msra.mxu0 %v122_v37 }
  0x4c   :  { %1265 = vmatprep.subr.mxu1 %v154_v38  ;;  %1071 = vmatprep.subr.mxu0 %v137_v39 }
  0x4d   :  { %1266 = vmatpush3.msra.mxu1 %v154_v38  ;;  %1072 = vmatpush3.msra.mxu0 %v121_v42 }
  0x4e   :  { %1267 = vmatprep.subr.mxu1 %v153_v43  ;;  %1073 = vmatprep.subr.mxu0 %v136_v44 }
  0x4f   :  { %1268 = vmatpush3.msra.mxu1 %v153_v43  ;;  %1074 = vmatpush3.msra.mxu0 %v120_v47 }
  0x50   :  { %1269 = vmatprep.subr.mxu1 %v152_v48  ;;  %1075 = vmatprep.subr.mxu0 %v135_v51  ;;  %v434_v51 = vlaneseq }
  0x51   :  { %231 = vmatprep.mubr.f32.mxu0 %v1656_v40  ;;  %1076 = vmatpush3.msra.mxu0 %v119_v52 }
  0x52   :  { %1270 = vmatpush3.msra.mxu1 %v152_v48  ;;  %1034 = vmatmul.mubr.msk.f32.vlgmr.msra.gmra.mxu0 %vm1670_vm2, %v94_v53  ;;  %v435_v52 = vshrl.u32 %v434_v51, 7  ;;  %v611_v51 = vld [vmem:[#allocation7 + $0xd0] sm:$0xff] }
  0x53   :  { %1271 = vmatprep.subr.mxu1 %v151_v57  ;;  %1273 = vmatprep.mubr.f32.mxu1 %v109_v59 }
  0x54   :  { %1272 = vmatpush3.msra.mxu1 %v151_v57  ;;  %236 = vmatprep.mubr.f32.mxu0 %v1658_v41  ;;  %v1803_v53 = vsub.s32 0, %v435_v52  ;;  %v628_v52 = vld [vmem:[#allocation7 + $0x158] sm:$0xff] }
  0x55   :  { %1274 = vmatmul.mubr.msk.f32.vlgmr.msra.gmra.mxu1 %vm106_vm1, %v108_v50  ;;  %1279 = vmatprep.subr.mxu0 %v1584_v1 }
  0x56   :  { %1276 = vmatprep.mubr.f32.mxu1 %v112_v60  ;;  %237 = vmatmul.mubr.f32.gmra.mxu0 %v96_v61 }
  0x57   :  { %241 = vmatprep.mubr.f32.mxu0 %v1660_v45  ;;  %1314 = vmatprep.subr.mxu1 %v1584_v1 }
  0x58   :  { %1280 = vmatpush3.msra.mxu0 %v1692_v2  ;;  %1315 = vmatpush3.msra.mxu1 %v1692_v2 }
  0x59   :  { %1277 = vmatmul.mubr.msk.f32.gmra.mxu1 %vm106_vm1, %v111_v55  ;;  %1281 = vmatprep.subr.mxu0 %v1584_v1 }
  0x5a   :  { %1036 = vmatmul.mubr.msk.f32.gmra.mxu0 %vm1670_vm2, %v97_v62  ;;  %1316 = vmatprep.subr.mxu1 %v1584_v1 }
  0x5b   :  { %246 = vmatprep.mubr.f32.mxu0 %v1662_v46  ;;  %1282 = vmatpush3.msra.mxu0 %v1698_v3 }
  0x5c   :  { %1317 = vmatpush3.msra.mxu1 %v1698_v3  ;;  %1283 = vmatprep.subr.mxu0 %v1584_v1 }
  0x5d   :  { %1318 = vmatprep.subr.mxu1 %v1584_v1  ;;  %1284 = vmatpush3.msra.mxu0 %v1704_v4 }
  0x5e   :  { %247 = vmatmul.mubr.f32.gmra.mxu0 %v99_v0  ;;  %1319 = vmatpush3.msra.mxu1 %v1704_v4 }
  0x5f   :  { %1285 = vmatprep.subr.mxu0 %v1584_v1  ;;  %1320 = vmatprep.subr.mxu1 %v1584_v1 }
  0x60   :  { %1286 = vmatpush3.msra.mxu0 %v1710_v5  ;;  %1321 = vmatpush3.msra.mxu1 %v1710_v5 }
  0x61   :  { %1287 = vmatprep.subr.mxu0 %v1584_v1  ;;  %1322 = vmatprep.subr.mxu1 %v1584_v1 }
  0x62   :  { %1288 = vmatpush3.msra.mxu0 %v1716_v6  ;;  %1323 = vmatpush3.msra.mxu1 %v1716_v6 }
  0x63   :  { %1289 = vmatprep.subr.mxu0 %v1584_v1  ;;  %1324 = vmatprep.subr.mxu1 %v1584_v1 }
  0x64   :  { %1290 = vmatpush3.msra.mxu0 %v1722_v7  ;;  %1325 = vmatpush3.msra.mxu1 %v1722_v7 }
  0x65   :  { %1291 = vmatprep.subr.mxu0 %v1584_v1  ;;  %1326 = vmatprep.subr.mxu1 %v1584_v1 }
  0x66   :  { %1292 = vmatpush3.msra.mxu0 %v1728_v8  ;;  %1327 = vmatpush3.msra.mxu1 %v1728_v8 }
  0x67   :  { %1293 = vmatprep.subr.mxu0 %v1584_v1  ;;  %1328 = vmatprep.subr.mxu1 %v1584_v1 }
  0x68   :  { %1294 = vmatpush3.msra.mxu0 %v1734_v9  ;;  %1329 = vmatpush3.msra.mxu1 %v1734_v9 }
  0x69   :  { %1295 = vmatprep.subr.mxu0 %v1584_v1  ;;  %1330 = vmatprep.subr.mxu1 %v1584_v1 }
  0x6a   :  { %1296 = vmatpush3.msra.mxu0 %v1740_v10  ;;  %1331 = vmatpush3.msra.mxu1 %v1740_v10 }
  0x6b   :  { %1297 = vmatprep.subr.mxu0 %v1584_v1  ;;  %1332 = vmatprep.subr.mxu1 %v1584_v1 }
  0x6c   :  { %1298 = vmatpush3.msra.mxu0 %v1746_v11  ;;  %1333 = vmatpush3.msra.mxu1 %v1746_v11 }
  0x6d   :  { %1299 = vmatprep.subr.mxu0 %v1584_v1  ;;  %1334 = vmatprep.subr.mxu1 %v1584_v1 }
  0x6e   :  { %1300 = vmatpush3.msra.mxu0 %v1752_v12  ;;  %1335 = vmatpush3.msra.mxu1 %v1752_v12 }
  0x6f   :  { %1301 = vmatprep.subr.mxu0 %v1584_v1  ;;  %1336 = vmatprep.subr.mxu1 %v1584_v1 }
  0x70   :  { %1302 = vmatpush3.msra.mxu0 %v1758_v13  ;;  %1337 = vmatpush3.msra.mxu1 %v1758_v13 }
  0x71   :  { %1303 = vmatprep.subr.mxu0 %v1584_v1  ;;  %1338 = vmatprep.subr.mxu1 %v1584_v1 }
  0x72   :  { %1304 = vmatpush3.msra.mxu0 %v1764_v14  ;;  %1339 = vmatpush3.msra.mxu1 %v1764_v14 }
  0x73   :  { %1305 = vmatprep.subr.mxu0 %v1584_v1  ;;  %1340 = vmatprep.subr.mxu1 %v1584_v1 }
  0x74   :  { %1306 = vmatpush3.msra.mxu0 %v1770_v15  ;;  %1341 = vmatpush3.msra.mxu1 %v1770_v15 }
  0x75   :  { %1307 = vmatprep.subr.mxu0 %v1584_v1  ;;  %1342 = vmatprep.subr.mxu1 %v1584_v1 }
  0x76   :  { %1308 = vmatpush3.msra.mxu0 %v1776_v16  ;;  %1311 = vmatprep.mubr.msk.f32.mxu0 %vm1585_vm3, %v1584_v1 }
  0x77   :  { %1309 = vmatprep.subr.mxu0 %v1584_v1  ;;  %1343 = vmatpush3.msra.mxu1 %v1776_v16 }
  0x78   :  { %1310 = vmatpush3.msra.mxu0 %v1778_v17  ;;  %1344 = vmatprep.subr.mxu1 %v1584_v1 }
  0x79   :  { %1345 = vmatpush3.msra.mxu1 %v1778_v17  ;;  %1346 = vmatprep.mubr.msk.f32.mxu1 %vm1585_vm3, %v1584_v1 }
 0x112   :  { %v1077_v18 = vpop.f32.mrf.mxu0 }
 0x114   :  { %v1078_v19 = vpop.f32.mrf.mxu0 }
 0x115   :  { %v1275_v20 = vpop.f32.mrf.mxu1  ;;  %v1079_v27 = vadd.f32 %v1078_v19, %v1077_v18 }
 0x116   :  { %v1080_v21 = vpop.f32.mrf.mxu0 }
 0x117   :  { %v318_v22 = vpop.f32.mrf.mxu1 }
 0x118   :  { %v1081_v23 = vpop.f32.mrf.mxu0  ;;  %v1793_v33 = vadd.f32 %v1079_v27, %v318_v22 }
 0x119   :  { %v1278_v24 = vpop.f32.mrf.mxu1  ;;  %v1082_v25 = vadd.f32 %v1081_v23, %v1080_v21 }
 0x11a   :  { %v1083_v26 = vpop.f32.mrf.mxu0 }
 0x11b   :  { %v328_v29 = vpop.f32.mrf.mxu1  ;;  %v1791_v30 = vadd.f32 %v1275_v20, %v1082_v25 }
 0x11c   :  { %v1084_v28 = vpop.f32.mrf.mxu0 }
 0x11d   :  { %v1085_v31 = vadd.f32 %v1084_v28, %v1083_v26  ;;  %v337_v36 = vadd.f32 %v1791_v30, %v1793_v33 }
 0x11e   :  { %v1086_v32 = vpop.f32.mrf.mxu0 }
 0x11f   :  { %v1795_v34 = vadd.f32 %v1085_v31, %v328_v29  ;;  %v616_v29 = vld [vmem:[#allocation7 + $0xf8] sm:$0xff] }
 0x120   :  { %v1087_v35 = vpop.f32.mrf.mxu0  ;;  %1143 = vmatprep.subr.mxu0 %v616_v29  ;;  %v600_v31 = vld [vmem:[#allocation7 + $0x78] sm:$0xff]  ;;  %v621_v29 = vld [vmem:[#allocation7 + $0x120] sm:$0xff] }
 0x121   :  { %v1088_v37 = vadd.f32 %v1087_v35, %v1086_v32  ;;  %v338_v38 = vadd.f32 %v337_v36, %v1795_v34  ;;  %v615_v32 = vld [vmem:[#allocation7 + $0xf0] sm:$0xff]  ;;  %v632_v35 = vld [vmem:[#allocation7 + $0x178] sm:$0xff] }
 0x122   :  { %1349 = vmatprep.subr.mxu1 %v632_v35  ;;  %v599_v36 = vld [vmem:[#allocation7 + $0x70] sm:$0xff] }
 0x123   :  { %v1800_v39 = vadd.f32 %v1278_v24, %v1088_v37  ;;  %v614_v37 = vld [vmem:[#allocation7 + $0xe8] sm:$0xff] }
 0x125   :  { %v339_v42 = vadd.f32 %v338_v38, %v1800_v39  ;;  %v631_v38 = vld [vmem:[#allocation7 + $0x170] sm:$0xff] }
 0x127   :  { %v340_v43 = vrot.slane %v339_v42, 4 }
 0x129   :  { %v341_v44 = vadd.f32 %v340_v43, %v339_v42  ;;  %v598_v42 = vld [vmem:[#allocation7 + $0x68] sm:$0xff]  ;;  %v613_v43 = vld [vmem:[#allocation7 + $0xe0] sm:$0xff] }
 0x12b   :  { %v342_v47 = vrot.slane %v341_v44, 2 }
 0x12d   :  { %v343_v48 = vadd.f32 %v342_v47, %v341_v44  ;;  %v630_v44 = vld [vmem:[#allocation7 + $0x168] sm:$0xff]  ;;  %v597_v47 = vld [vmem:[#allocation7 + $0x60] sm:$0xff] }
 0x12f   :  { %v344_v49 = vrot.slane %v343_v48, 1 }
 0x131   :  { %v345_v50 = vadd.f32 %v344_v49, %v343_v48  ;;  %v612_v48 = vld [vmem:[#allocation7 + $0xd8] sm:$0xff]  ;;  %v629_v49 = vld [vmem:[#allocation7 + $0x160] sm:$0xff] }
 0x133   :  { %1312 = vmatmul.mubr.f32.vlgmr.msra.gmra.mxu0 %v345_v50  ;;  %v596_v50 = vld [vmem:[#allocation7 + $0x58] sm:$0xff] }
 0x134   :  { %1144 = vmatpush3.msra.mxu0 %v600_v31  ;;  %v588_v31 = vld [vmem:[#allocation7 + $0x18] sm:$0xff] }
 0x135   :  { %1145 = vmatprep.subr.mxu0 %v615_v32  ;;  %v603_v32 = vld [vmem:[#allocation7 + $0x90] sm:$0xff] }
 0x136   :  { %1146 = vmatpush3.msra.mxu0 %v599_v36  ;;  %v587_v36 = vld [vmem:[#allocation7 + $0x10] sm:$0xff] }
 0x137   :  { %1147 = vmatprep.subr.mxu0 %v614_v37  ;;  %v602_v37 = vld [vmem:[#allocation7 + $0x88] sm:$0xff] }
 0x138   :  { %1148 = vmatpush3.msra.mxu0 %v598_v42  ;;  %v586_v42 = vld [vmem:[#allocation7 + $0x8] sm:$0xff] }
 0x139   :  { %1149 = vmatprep.subr.mxu0 %v613_v43  ;;  %v601_v43 = vld [vmem:[#allocation7 + $0x80] sm:$0xff] }
 0x13a   :  { %1150 = vmatpush3.msra.mxu0 %v597_v47  ;;  %v585_v47 = vld [vmem:[#allocation7] sm:$0xff] }
 0x13b   :  { %1151 = vmatprep.subr.mxu0 %v612_v48  ;;  %v617_v48 = vld [vmem:[#allocation7 + $0x100] sm:$0xff] }
 0x13c   :  { %1152 = vmatpush3.msra.mxu0 %v596_v50 }
 0x13d   :  { %1153 = vmatprep.subr.mxu0 %v611_v51 }
 0x1f3   :  { %v428_v54 = vpop.f32.mrf.mxu0 }
 0x1f4   :  { %v1805_v55 = vmul.f32 0.001953125, %v428_v54  ;;  %v595_v54 = vld [vmem:[#allocation7 + $0x50] sm:$0xff] }
 0x1f5   :  { %v1313_v57 = vpop.f32.mrf.mxu0  ;;  %1154 = vmatpush3.msra.mxu0 %v595_v54  ;;  %v526_v54 = vld [vmem:[%s1927_s4] sm:$0x1] }
 0x1f6   :  { %v437_v58 = vrot.slane %v1805_v55, %v1803_v53  ;;  %v610_v57 = vld [vmem:[#allocation7 + $0xc8] sm:$0xff] }
 0x1f7   :  { %1155 = vmatprep.subr.mxu0 %v610_v57 }
 0x1f8   :  { %v438_v59 = vsub.f32 %v1793_v33, %v437_v58  ;;  %v439_v60 = vsub.f32 %v1791_v30, %v437_v58  ;;  %v440_v61 = vsub.f32 %v1795_v34, %v437_v58  ;;  %v441_v62 = vsub.f32 %v1800_v39, %v437_v58  ;;  %v627_v58 = vld [vmem:[#allocation7 + $0x150] sm:$0xff] }
 0x1fa   :  { %v442_v63 = vmul.f32 %v438_v59, %v438_v59  ;;  %v443_v0 = vmul.f32 %v439_v60, %v439_v60  ;;  %v444_v18 = vmul.f32 %v440_v61, %v440_v61  ;;  %v445_v20 = vmul.f32 %v441_v62, %v441_v62  ;;  %v594_v59 = vld [vmem:[#allocation7 + $0x48] sm:$0xff]  ;;  %v609_v60 = vld [vmem:[#allocation7 + $0xc0] sm:$0xff] }
 0x1fb   :  { %1156 = vmatpush3.msra.mxu0 %v594_v59  ;;  %v626_v61 = vld [vmem:[#allocation7 + $0x148] sm:$0xff]  ;;  %v593_v62 = vld [vmem:[#allocation7 + $0x40] sm:$0xff] }
 0x1fc   :  { %v446_v19 = vadd.f32 %v443_v0, %v442_v63  ;;  %1157 = vmatprep.subr.mxu0 %v609_v60  ;;  %v608_v63 = vld [vmem:[#allocation7 + $0xb8] sm:$0xff]  ;;  %v625_v0 = vld [vmem:[#allocation7 + $0x140] sm:$0xff] }
 0x1fd   :  { %1158 = vmatpush3.msra.mxu0 %v593_v62  ;;  %v530_v59 = vld [vmem:[%s1928_s5] sm:$0x1] }
 0x1fe   :  { %v447_v21 = vadd.f32 %v446_v19, %v444_v18  ;;  %1159 = vmatprep.subr.mxu0 %v608_v63  ;;  %v592_v18 = vld [vmem:[#allocation7 + $0x38] sm:$0xff]  ;;  %v607_v19 = vld [vmem:[#allocation7 + $0xb0] sm:$0xff] }
 0x1ff   :  { %1160 = vmatpush3.msra.mxu0 %v592_v18 }
 0x200   :  { %v448_v22 = vadd.f32 %v447_v21, %v445_v20  ;;  %v624_v20 = vld [vmem:[#allocation7 + $0x138] sm:$0xff]  ;;  %1161 = vmatprep.subr.mxu0 %v607_v19  ;;  %v591_v21 = vld [vmem:[#allocation7 + $0x30] sm:$0xff] }
 0x201   :  { %1162 = vmatpush3.msra.mxu0 %v591_v21 }
 0x202   :  { %v449_v23 = vrot.slane %v448_v22, 4 }
 0x204   :  { %v450_v24 = vadd.f32 %v449_v23, %v448_v22  ;;  %v606_v22 = vld [vmem:[#allocation7 + $0xa8] sm:$0xff]  ;;  %v623_v23 = vld [vmem:[#allocation7 + $0x130] sm:$0xff] }
 0x205   :  { %1163 = vmatprep.subr.mxu0 %v606_v22 }
 0x206   :  { %v451_v25 = vrot.slane %v450_v24, 2 }
 0x208   :  { %v452_v26 = vadd.f32 %v451_v25, %v450_v24  ;;  %v590_v24 = vld [vmem:[#allocation7 + $0x28] sm:$0xff]  ;;  %v605_v25 = vld [vmem:[#allocation7 + $0xa0] sm:$0xff] }
 0x209   :  { %1164 = vmatpush3.msra.mxu0 %v590_v24 }
 0x20a   :  { %v453_v27 = vrot.slane %v452_v26, 1  ;;  %1165 = vmatprep.subr.mxu0 %v605_v25 }
 0x20c   :  { %v454_v28 = vadd.f32 %v453_v27, %v452_v26  ;;  %v622_v26 = vld [vmem:[#allocation7 + $0x128] sm:$0xff]  ;;  %v589_v27 = vld [vmem:[#allocation7 + $0x20] sm:$0xff] }
 0x20d   :  { %1166 = vmatpush3.msra.mxu0 %v589_v27 }
 0x20e   :  { %1347 = vmatmul.mubr.f32.vlgmr.msra.gmra.mxu1 %v454_v28  ;;  %v604_v28 = vld [vmem:[#allocation7 + $0x98] sm:$0xff] }
 0x20f   :  { %1350 = vmatpush3.msra.mxu1 %v632_v35  ;;  %v620_v35 = vld [vmem:[#allocation7 + $0x118] sm:$0xff]  ;;  %1167 = vmatprep.subr.mxu0 %v604_v28 }
 0x210   :  { %1351 = vmatprep.subr.mxu1 %v631_v38  ;;  %1168 = vmatpush3.msra.mxu0 %v588_v31 }
 0x211   :  { %1352 = vmatpush3.msra.mxu1 %v631_v38  ;;  %v619_v38 = vld [vmem:[#allocation7 + $0x110] sm:$0xff]  ;;  %1169 = vmatprep.subr.mxu0 %v603_v32 }
 0x212   :  { %1353 = vmatprep.subr.mxu1 %v630_v44  ;;  %1170 = vmatpush3.msra.mxu0 %v587_v36 }
 0x213   :  { %1354 = vmatpush3.msra.mxu1 %v630_v44  ;;  %1171 = vmatprep.subr.mxu0 %v602_v37  ;;  %v618_v44 = vld [vmem:[#allocation7 + $0x108] sm:$0xff] }
 0x214   :  { %1355 = vmatprep.subr.mxu1 %v629_v49  ;;  %1172 = vmatpush3.msra.mxu0 %v586_v42 }
 0x215   :  { %1356 = vmatpush3.msra.mxu1 %v629_v49  ;;  %1173 = vmatprep.subr.mxu0 %v601_v43 }
 0x216   :  { %1357 = vmatprep.subr.mxu1 %v628_v52  ;;  %1174 = vmatpush3.msra.mxu0 %v585_v47 }
 0x217   :  { %1358 = vmatpush3.msra.mxu1 %v628_v52  ;;  %1387 = vmatprep.subr.mxu0 %v1584_v1 }
 0x218   :  { %1359 = vmatprep.subr.mxu1 %v627_v58 }
 0x219   :  { %1360 = vmatpush3.msra.mxu1 %v627_v58 }
 0x21a   :  { %1361 = vmatprep.subr.mxu1 %v626_v61 }
 0x21b   :  { %1362 = vmatpush3.msra.mxu1 %v626_v61 }
 0x21c   :  { %1363 = vmatprep.subr.mxu1 %v625_v0 }
 0x21d   :  { %1364 = vmatpush3.msra.mxu1 %v625_v0 }
 0x21e   :  { %1365 = vmatprep.subr.mxu1 %v624_v20 }
 0x21f   :  { %1366 = vmatpush3.msra.mxu1 %v624_v20 }
 0x220   :  { %1367 = vmatprep.subr.mxu1 %v623_v23 }
 0x221   :  { %1368 = vmatpush3.msra.mxu1 %v623_v23 }
 0x222   :  { %1369 = vmatprep.subr.mxu1 %v622_v26 }
 0x223   :  { %1370 = vmatpush3.msra.mxu1 %v622_v26 }
 0x224   :  { %1371 = vmatprep.subr.mxu1 %v621_v29 }
 0x225   :  { %1372 = vmatpush3.msra.mxu1 %v621_v29 }
 0x226   :  { %1373 = vmatprep.subr.mxu1 %v620_v35 }
 0x227   :  { %1374 = vmatpush3.msra.mxu1 %v620_v35 }
 0x228   :  { %1375 = vmatprep.subr.mxu1 %v619_v38 }
 0x229   :  { %1376 = vmatpush3.msra.mxu1 %v619_v38 }
 0x22a   :  { %1377 = vmatprep.subr.mxu1 %v618_v44 }
 0x22b   :  { %1378 = vmatpush3.msra.mxu1 %v618_v44 }
 0x22c   :  { %1379 = vmatprep.subr.mxu1 %v617_v48 }
 0x22d   :  { %1380 = vmatpush3.msra.mxu1 %v617_v48 }
 0x22e   :  { %1422 = vmatprep.subr.mxu1 %v1584_v1 }
 0x2ce   :  { %v521_v49 = vpop.f32.mrf.mxu1 }
 0x2cf   :  { %v525_v50 = vmul.f32 0.001953125, %v521_v49 }
 0x2d0   :  { %v1348_v51 = vpop.f32.mrf.mxu1 }
 0x2d1   :  { %v527_v52 = vadd.f32 1e-05, %v525_v50 }
 0x2d3   :  { %1466 = vrsqrt.f32 %v527_v52 }
 0x2e0   :  { %v1467_v57 = vpop.eup %1466 }
 0x2e1   :  { %v529_v58 = vmul.f32 %v1467_v57, %v526_v54 }
 0x2e3   :  { %v531_v60 = vmul.f32 %v529_v58, %v1805_v55  ;;  %v537_v61 = vrot.slane %v529_v58, %v1803_v53 }
 0x2e5   :  { %v532_v62 = vsub.f32 %v530_v59, %v531_v60  ;;  %v539_v63 = vmul.f32 %v537_v61, %v1793_v33  ;;  %v540_v18 = vmul.f32 %v537_v61, %v1791_v30  ;;  %v541_v19 = vmul.f32 %v537_v61, %v1795_v34 }
 0x2e6   :  { %v542_v20 = vmul.f32 %v537_v61, %v1800_v39 }
 0x2e7   :  { %v547_v0 = vrot.slane %v532_v62, %v1803_v53 }
 0x2e9   :  { %v549_v21 = vadd.f32 %v547_v0, %v539_v63  ;;  %v550_v22 = vadd.f32 %v547_v0, %v540_v18  ;;  %v551_v23 = vadd.f32 %v547_v0, %v541_v19  ;;  %v552_v24 = vadd.f32 %v547_v0, %v542_v20 }
 0x2eb   :  { %v553_v25 = vmax.f32 %v549_v21, 0.0  ;;  %v554_v26 = vmax.f32 %v550_v22, 0.0  ;;  %v555_v55 = vmax.f32 %v551_v23, 0.0  ;;  %v556_v27 = vmax.f32 %v552_v24, 0.0 }
 0x2ed   :  { %v561_v28 = vrot.slane %v553_v25, 7  ;;  %697 = vmatprep.mubr.f32.mxu0 %v553_v25  ;;  %v573_v29 = vrot.slane %v553_v25, 1  ;;  %v574_v33 = vrot.slane %v554_v26, 1  ;;  %v576_v31 = vrot.slane %v555_v55, 1 }
 0x2ee   :  { %v577_v32 = vrot.slane %v556_v27, 1  ;;  %v562_v35 = vrot.slane %v554_v26, 7  ;;  %v564_v36 = vrot.slane %v555_v55, 7  ;;  %v565_v37 = vrot.slane %v556_v27, 7 }
 0x2ef   :  { %1040 = vmatmul.mubr.msk.f32.vlgmr.msra.gmra.mxu0 %vm1670_vm2, %v561_v28  ;;  %v575_v30 = vsel %vm106_vm1, %v573_v29, %v574_v33 }
 0x2f0   :  { %702 = vmatprep.mubr.f32.mxu0 %v554_v26  ;;  %1381 = vmatprep.mubr.f32.mxu1 %v575_v30  ;;  %v578_v34 = vsel %vm106_vm1, %v576_v31, %v577_v32  ;;  %v563_v39 = vsel %vm93_vm0, %v561_v28, %v562_v35 }
 0x2f1   :  { %1382 = vmatmul.mubr.msk.f32.vlgmr.msra.gmra.mxu1 %vm106_vm1, %v574_v33  ;;  %1388 = vmatpush3.msra.mxu0 %v1692_v2 }
 0x2f2   :  { %1384 = vmatprep.mubr.f32.mxu1 %v578_v34  ;;  %1389 = vmatprep.subr.mxu0 %v1584_v1  ;;  %v975_v34 = vld [vmem:[%s1929_s6] sm:$0x1]  ;;  %s1586_s6 = smov [#allocation10]  }
 0x2f3   :  { %703 = vmatmul.mubr.f32.gmra.mxu0 %v563_v39  ;;  %1423 = vmatpush3.msra.mxu1 %v1692_v2  ;;  %v566_v2 = vsel %vm93_vm0, %v564_v36, %v565_v37  ;;  %v979_v37 = vld [vmem:[%s1930_s7] sm:$0x1]  ;;  %s1019_s29 = sshll.u32 %s1586_s6, 4  ;;  %s1020_s29 = int_to_ptr.vmem [resolvable:$true] %s1019_s29 }
 0x2f4   :  { %707 = vmatprep.mubr.f32.mxu0 %v555_v55  ;;  %1390 = vmatpush3.msra.mxu0 %v1698_v3  ;;  %s1550_s7 = scalar_lea.vmem %s1020_s29, 512  ;;  %p1555_p7 = scmp.lt.s32.totalorder %s1020_s29, %s1020_s29 }
 0x2f5   :  { %1385 = vmatmul.mubr.msk.f32.gmra.mxu1 %vm106_vm1, %v577_v32  ;;  %1391 = vmatprep.subr.mxu0 %v1584_v1  ;;  %p1551_p6 = scmp.ne.s32.totalorder %s1020_s29, %s1550_s7  ;;  %p1556_p8 = scmp.lt.s32.totalorder %s1550_s7, %s1550_s7 }
 0x2f6   :  { %1392 = vmatpush3.msra.mxu0 %v1704_v4  ;;  %1424 = vmatprep.subr.mxu1 %v1584_v1 }
 0x2f7   :  { %1042 = vmatmul.mubr.msk.f32.gmra.mxu0 %vm1670_vm2, %v564_v36  ;;  %1393 = vmatprep.subr.mxu0 %v1584_v1  ;;  %p1557_p9 = por %p1556_p8, %p1555_p7 }
 0x2f8   :  { %712 = vmatprep.mubr.f32.mxu0 %v556_v27  ;;  %1394 = vmatpush3.msra.mxu0 %v1710_v5 }
 0x2f9   :  { %1395 = vmatprep.subr.mxu0 %v1584_v1  ;;  %1425 = vmatpush3.msra.mxu1 %v1698_v3  ;;  %p1558_p10 = pnand %p1557_p9, %p1551_p6 }
 0x2fa   :  { %1396 = vmatpush3.msra.mxu0 %v1716_v6  ;;  %1426 = vmatprep.subr.mxu1 %v1584_v1 }
 0x2fb   :  { %713 = vmatmul.mubr.f32.gmra.mxu0 %v566_v2  ;;  %1397 = vmatprep.subr.mxu0 %v1584_v1 }
 0x2fc   :  { %1398 = vmatpush3.msra.mxu0 %v1722_v7  ;;  %1419 = vmatprep.mubr.msk.f32.mxu0 %vm1585_vm3, %v1584_v1 }
 0x2fd   :  { %1399 = vmatprep.subr.mxu0 %v1584_v1  ;;  %1427 = vmatpush3.msra.mxu1 %v1704_v4 }
 0x2fe   :  { %1400 = vmatpush3.msra.mxu0 %v1728_v8  ;;  %1428 = vmatprep.subr.mxu1 %v1584_v1 }
 0x2ff   :  { %1401 = vmatprep.subr.mxu0 %v1584_v1  ;;  %1429 = vmatpush3.msra.mxu1 %v1710_v5 }
 0x300   :  { %1402 = vmatpush3.msra.mxu0 %v1734_v9  ;;  %1430 = vmatprep.subr.mxu1 %v1584_v1 }
 0x301   :  { %1403 = vmatprep.subr.mxu0 %v1584_v1  ;;  %1431 = vmatpush3.msra.mxu1 %v1716_v6 }
 0x302   :  { %1404 = vmatpush3.msra.mxu0 %v1740_v10  ;;  %1432 = vmatprep.subr.mxu1 %v1584_v1 }
 0x303   :  { %1405 = vmatprep.subr.mxu0 %v1584_v1  ;;  %1433 = vmatpush3.msra.mxu1 %v1722_v7 }
 0x304   :  { %1406 = vmatpush3.msra.mxu0 %v1746_v11  ;;  %1434 = vmatprep.subr.mxu1 %v1584_v1 }
 0x305   :  { %1407 = vmatprep.subr.mxu0 %v1584_v1  ;;  %1435 = vmatpush3.msra.mxu1 %v1728_v8 }
 0x306   :  { %1408 = vmatpush3.msra.mxu0 %v1752_v12  ;;  %1436 = vmatprep.subr.mxu1 %v1584_v1 }
 0x307   :  { %1409 = vmatprep.subr.mxu0 %v1584_v1  ;;  %1437 = vmatpush3.msra.mxu1 %v1734_v9 }
 0x308   :  { %1410 = vmatpush3.msra.mxu0 %v1758_v13  ;;  %1438 = vmatprep.subr.mxu1 %v1584_v1 }
 0x309   :  { %1411 = vmatprep.subr.mxu0 %v1584_v1  ;;  %1439 = vmatpush3.msra.mxu1 %v1740_v10 }
 0x30a   :  { %1412 = vmatpush3.msra.mxu0 %v1764_v14  ;;  %1440 = vmatprep.subr.mxu1 %v1584_v1 }
 0x30b   :  { %1413 = vmatprep.subr.mxu0 %v1584_v1  ;;  %1441 = vmatpush3.msra.mxu1 %v1746_v11 }
 0x30c   :  { %1414 = vmatpush3.msra.mxu0 %v1770_v15  ;;  %1442 = vmatprep.subr.mxu1 %v1584_v1 }
 0x30d   :  { %1415 = vmatprep.subr.mxu0 %v1584_v1  ;;  %1443 = vmatpush3.msra.mxu1 %v1752_v12 }
 0x30e   :  { %1416 = vmatpush3.msra.mxu0 %v1776_v16  ;;  %1444 = vmatprep.subr.mxu1 %v1584_v1 }
 0x30f   :  { %1417 = vmatprep.subr.mxu0 %v1584_v1  ;;  %1445 = vmatpush3.msra.mxu1 %v1758_v13 }
 0x310   :  { %1418 = vmatpush3.msra.mxu0 %v1778_v17  ;;  %1446 = vmatprep.subr.mxu1 %v1584_v1 }
 0x311   :  { %1447 = vmatpush3.msra.mxu1 %v1764_v14  ;;  %1454 = vmatprep.mubr.msk.f32.mxu1 %vm1585_vm3, %v1584_v1 }
 0x312   :  { %1448 = vmatprep.subr.mxu1 %v1584_v1 }
 0x313   :  { %1449 = vmatpush3.msra.mxu1 %v1770_v15 }
 0x314   :  { %1450 = vmatprep.subr.mxu1 %v1584_v1 }
 0x315   :  { %1451 = vmatpush3.msra.mxu1 %v1776_v16 }
 0x316   :  { %1452 = vmatprep.subr.mxu1 %v1584_v1 }
 0x317   :  { %1453 = vmatpush3.msra.mxu1 %v1778_v17 }
 0x3af   :  { %v1175_v56 = vpop.f32.mrf.mxu0 }
 0x3b1   :  { %v1176_v3 = vpop.f32.mrf.mxu0  ;;  %v1383_v4 = vpop.f32.mrf.mxu1 }
 0x3b2   :  { %v1177_v11 = vadd.f32 %v1176_v3, %v1175_v56 }
 0x3b3   :  { %v1178_v5 = vpop.f32.mrf.mxu0  ;;  %v784_v6 = vpop.f32.mrf.mxu1 }
 0x3b4   :  { %v785_v16 = vadd.f32 %v1177_v11, %v784_v6 }
 0x3b5   :  { %v1179_v7 = vpop.f32.mrf.mxu0  ;;  %v1386_v9 = vpop.f32.mrf.mxu1 }
 0x3b6   :  { %v1180_v8 = vadd.f32 %v1179_v7, %v1178_v5 }
 0x3b7   :  { %v1181_v10 = vpop.f32.mrf.mxu0  ;;  %v794_v15 = vpop.f32.mrf.mxu1 }
 0x3b8   :  { %v790_v13 = vadd.f32 %v1383_v4, %v1180_v8 }
 0x3b9   :  { %v1182_v12 = vpop.f32.mrf.mxu0 }
 0x3ba   :  { %v1183_v14 = vadd.f32 %v1182_v12, %v1181_v10  ;;  %v803_v43 = vadd.f32 %v790_v13, %v785_v16 }
 0x3bb   :  { %v1184_v38 = vpop.f32.mrf.mxu0 }
 0x3bc   :  { %v795_v42 = vadd.f32 %v1183_v14, %v794_v15 }
 0x3bd   :  { %v1185_v1 = vpop.f32.mrf.mxu0 }
 0x3be   :  { %v1186_v17 = vadd.f32 %v1185_v1, %v1184_v38  ;;  %v804_v44 = vadd.f32 %v803_v43, %v795_v42 }
 0x3c0   :  { %v800_v47 = vadd.f32 %v1386_v9, %v1186_v17 }
 0x3c2   :  { %v805_v48 = vadd.f32 %v804_v44, %v800_v47 }
 0x3c4   :  { %v806_v49 = vrot.slane %v805_v48, 4 }
 0x3c6   :  { %v807_v50 = vadd.f32 %v806_v49, %v805_v48 }
 0x3c8   :  { %v808_v51 = vrot.slane %v807_v50, 2 }
 0x3ca   :  { %v809_v52 = vadd.f32 %v808_v51, %v807_v50 }
 0x3cc   :  { %v810_v54 = vrot.slane %v809_v52, 1 }
 0x3ce   :  { %v811_v57 = vadd.f32 %v810_v54, %v809_v52 }
 0x3d0   :  { %1420 = vmatmul.mubr.f32.vlgmr.msra.gmra.mxu0 %v811_v57 }
 0x490   :  { %v878_v58 = vpop.f32.mrf.mxu0 }
 0x491   :  { %v882_v59 = vmul.f32 0.001953125, %v878_v58 }
 0x492   :  { %v1421_v60 = vpop.f32.mrf.mxu0 }
 0x493   :  { %v886_v61 = vrot.slane %v882_v59, %v1803_v53 }
 0x495   :  { %v887_v62 = vsub.f32 %v785_v16, %v886_v61  ;;  %v888_v63 = vsub.f32 %v790_v13, %v886_v61  ;;  %v889_v0 = vsub.f32 %v795_v42, %v886_v61  ;;  %v890_v18 = vsub.f32 %v800_v47, %v886_v61 }
 0x497   :  { %v891_v19 = vmul.f32 %v887_v62, %v887_v62  ;;  %v892_v20 = vmul.f32 %v888_v63, %v888_v63  ;;  %v893_v21 = vmul.f32 %v889_v0, %v889_v0  ;;  %v894_v23 = vmul.f32 %v890_v18, %v890_v18 }
 0x499   :  { %v895_v22 = vadd.f32 %v892_v20, %v891_v19 }
 0x49b   :  { %v896_v24 = vadd.f32 %v895_v22, %v893_v21 }
 0x49d   :  { %v897_v25 = vadd.f32 %v896_v24, %v894_v23 }
 0x49f   :  { %v898_v26 = vrot.slane %v897_v25, 4 }
 0x4a1   :  { %v899_v55 = vadd.f32 %v898_v26, %v897_v25 }
 0x4a3   :  { %v900_v27 = vrot.slane %v899_v55, 2 }
 0x4a5   :  { %v901_v28 = vadd.f32 %v900_v27, %v899_v55 }
 0x4a7   :  { %v902_v29 = vrot.slane %v901_v28, 1 }
 0x4a9   :  { %v903_v33 = vadd.f32 %v902_v29, %v901_v28 }
 0x4ab   :  { %1455 = vmatmul.mubr.f32.vlgmr.msra.gmra.mxu1 %v903_v33 }
 0x56b   :  { %v970_v31 = vpop.f32.mrf.mxu1 }
 0x56c   :  { %v974_v32 = vmul.f32 0.001953125, %v970_v31 }
 0x56d   :  { %v1456_v35 = vpop.f32.mrf.mxu1 }
 0x56e   :  { %v976_v30 = vadd.f32 1e-05, %v974_v32 }
 0x570   :  { %1468 = vrsqrt.f32 %v976_v30 }
 0x57d   :  { %v1469_v39 = vpop.eup %1468 }
 0x57e   :  { %v978_v36 = vmul.f32 %v1469_v39, %v975_v34 }
 0x580   :  { %v980_v2 = vmul.f32 %v978_v36, %v882_v59  ;;  %v986_v56 = vrot.slane %v978_v36, %v1803_v53 }
 0x582   :  { %v981_v3 = vsub.f32 %v979_v37, %v980_v2  ;;  %v988_v4 = vmul.f32 %v986_v56, %v785_v16  ;;  %v989_v5 = vmul.f32 %v986_v56, %v790_v13  ;;  %v990_v6 = vmul.f32 %v986_v56, %v795_v42 }
 0x583   :  { %v991_v7 = vmul.f32 %v986_v56, %v800_v47 }
 0x584   :  { %v996_v8 = vrot.slane %v981_v3, %v1803_v53 }
 0x586   :  { %v998_v9 = vadd.f32 %v996_v8, %v988_v4  ;;  %v999_v10 = vadd.f32 %v996_v8, %v989_v5  ;;  %v1000_v11 = vadd.f32 %v996_v8, %v990_v6  ;;  %v1001_v12 = vadd.f32 %v996_v8, %v991_v7 }
 0x588   :  { %v1002_v14 = vadd.f32 %v998_v9, %v1656_v40  ;;  %v1003_v15 = vadd.f32 %v999_v10, %v1658_v41  ;;  %v1004_v38 = vadd.f32 %v1000_v11, %v1660_v45  ;;  %v1005_v1 = vadd.f32 %v1001_v12, %v1662_v46 }
 0x58a   :  { %v1006_v16 = vmax.f32 %v1002_v14, 0.0  ;;  %v1007_v13 = vmax.f32 %v1003_v15, 0.0  ;;  %v1008_v42 = vmax.f32 %v1004_v38, 0.0  ;;  %v1009_v43 = vmax.f32 %v1005_v1, 0.0 }
 0x58c   :  { %1010 = vst [vmem:[#allocation10] sm:$0xff] %v1006_v16  ;;  %1011 = vst [vmem:[#allocation10 + $0x8] sm:$0xff] %v1007_v13 }
 0x58d   :  { %1012 = vst [vmem:[#allocation10 + $0x10] sm:$0xff] %v1008_v42  ;;  %1013 = vst [vmem:[#allocation10 + $0x18] sm:$0xff] %v1009_v43 }
 0x58e   :  { %1561 = shalt.err (!%p1558_p10)
}
 0x58f   :  { %1025 = dma.vmem_to_hbm [thread:$0]  %s1020_s29, 512, %s1931_s8, [#allocation4], %s1580_s10, %s1580_s10, %s1581_s11  }
 0x590   :  { %1576 = dma.done.wait [#allocation4], 512  }
 0x591   :  { %1577 = vsyncadd [#allocation4], 4294966784 }
 0x592   :  { %1029 = vsyncpa [#allocation3], 1 }
 0x593   :  { %1030 = vsyncpa [#allocation6], 1 }
 0x594   :  { %1031 = vsyncpa [#allocation9], 1 }
 0x595   :  { %1032 = vsyncpa [#allocation4], 1 }

</bundles_post_ra>
